<compile_context>
chip_gen: v7x
topology: tpu7x:2x2x1
jax: 0.10.0
libtpu: 0.0.40
codegen_flags: <defaults>
</compile_context>

<pallas_src>
import functools

import jax
import jax.numpy as jnp
from jax.experimental import pallas as pl
from jax.experimental.pallas import tpu as pltpu


def bilstm_last_kernel(x_ref, wih_ref, whh_ref, b_ref, wlin_ref, blin_ref,
                       out_ref, *, T):
    """Bidirectional LSTM (PyTorch gate order i,f,g,o) + Linear on last timestep.

    x_ref:    (T*B, D)  time-major, pre-flattened input in VMEM
    wih_ref:  (D, 8H)   [fwd | bwd] input->gates weights (transposed vs PyTorch)
    whh_ref:  (H, 4H)   forward hidden->gates weights
    b_ref:    (1, 8H)   combined [b_ih_f+b_hh_f | b_ih_b+b_hh_b] bias
    wlin:     (1, 2H), blin: (1, 1)
    out_ref:  (B, 1)
    """
    TB, D = x_ref.shape
    B = TB // T
    H = whh_ref.shape[1] // 4

    whh = whh_ref[...]                                     # (H, 4H), loop-invariant

    # ---- Hoisted merged input projection: one (T*B,D)@(D,8H) matmul covers all
    # timesteps AND both directions; bias folded in. ----
    xproj = (jnp.dot(x_ref[...], wih_ref[...],
                     preferred_element_type=jnp.float32) + b_ref[...])  # (T*B, 8H)

    def gate_act(gates):
        # Full-vreg sigmoid (i, f, o need it); tanh only on the g slice (EUP is
        # on the serial per-step chain, no need to do 4x the transcendentals).
        sig = jax.nn.sigmoid(gates)
        g = jnp.tanh(gates[:, 2 * H:3 * H])
        return sig[:, 0:H], sig[:, H:2 * H], g, sig[:, 3 * H:4 * H]

    # ---- Forward recurrence, t = 0 peeled (h0 = c0 = 0) ----
    i0, _, g0, o0 = gate_act(xproj[0:B, 0:4 * H])
    c = i0 * g0                                            # f*c0 == 0
    h = o0 * jnp.tanh(c)

    # Fully unrolled remaining steps (T small and static): cross-iteration
    # visibility for the scheduler, no loop/control overhead.
    for t in range(1, T):
        gates = (xproj[t * B:(t + 1) * B, 0:4 * H]
                 + jnp.dot(h, whh, preferred_element_type=jnp.float32))
        i, f, g, o = gate_act(gates)
        c = f * c + i * g
        h = o * jnp.tanh(c)
    h_fwd = h

    # ---- Backward direction, last-output step only (zero initial state) ----
    # Its gates are just the upper 4H lanes of the last timestep's rows.
    ib, _, gb, ob = gate_act(xproj[(T - 1) * B:T * B, 4 * H:8 * H])
    c_b = ib * gb                                          # f_b*c0 == 0
    h_bwd = ob * jnp.tanh(c_b)

    # ---- Head: Linear(2H -> 1) as VPU multiplies + ONE cross-lane reduction ----
    wlin = wlin_ref[...]                                   # (1, 2H)
    out_ref[...] = (jnp.sum(h_fwd * wlin[:, :H] + h_bwd * wlin[:, H:],
                            axis=1, keepdims=True)
                    + blin_ref[...])


def init_params(key, input_size, hidden_size, output_size=1):
    """Deterministic init mirroring PyTorch's U(-1/sqrt(H), 1/sqrt(H)) scheme."""
    H = hidden_size
    bound = 1.0 / (H ** 0.5)
    keys = jax.random.split(key, 10)

    def u(k, shape, b):
        return jax.random.uniform(k, shape, jnp.float32, -b, b)

    wih_f = u(keys[0], (input_size, 4 * H), bound)
    wih_b = u(keys[4], (input_size, 4 * H), bound)
    b_f = u(keys[2], (1, 4 * H), bound) + u(keys[3], (1, 4 * H), bound)
    b_b = u(keys[5], (1, 4 * H), bound) + u(keys[6], (1, 4 * H), bound)

    params = {
        # Merged [fwd | bwd] input->gates weight and bias: one 8H-wide matmul.
        "wih": jnp.concatenate([wih_f, wih_b], axis=1),     # (D, 8H)
        "b":   jnp.concatenate([b_f, b_b], axis=1),         # (1, 8H)
        "whh_f": u(keys[1], (H, 4 * H), bound),              # (H, 4H)
        # whh_b exists in the PyTorch module but never influences
        # bilstm_out[:, -1, H:] (the first backward step starts from h0 = 0),
        # so it is not created / passed to the kernel.
    }
    lin_bound = 1.0 / ((2 * H) ** 0.5)
    params["wlin"] = u(keys[7], (1, 2 * H), lin_bound)       # row-major VPU head
    params["blin"] = u(keys[8], (1, output_size), lin_bound)
    return params


@jax.jit
def bilstm_model_forward(x, params):
    """x: (B, T, D) batch-first, as in the PyTorch module. Returns (B, 1).

    jitted end-to-end so the transpose/flatten/cast and the pallas_call compile
    into one program (the kernel itself is ~1-2 us; host dispatch otherwise
    dominates).
    """
    B, T, D = x.shape
    # Time-major + flatten OUTSIDE the kernel (in-kernel reshapes aren't views).
    x2d = jnp.transpose(x, (1, 0, 2)).reshape(T * B, D).astype(jnp.float32)

    args = (x2d, params["wih"], params["whh_f"], params["b"],
            params["wlin"], params["blin"])

    # Tiny footprint (~60 KB): fully VMEM-resident, no grid, no tiling.
    in_specs = [pl.BlockSpec(memory_space=pltpu.MemorySpace.VMEM) for _ in args]
    out_spec = pl.BlockSpec(memory_space=pltpu.MemorySpace.VMEM)

    return pl.pallas_call(
        functools.partial(bilstm_last_kernel, T=T),
        out_shape=jax.ShapeDtypeStruct((B, 1), jnp.float32),
        in_specs=in_specs,
        out_specs=out_spec,
    )(*args)


if __name__ == "__main__":
    # Small shapes consistent with the module's forward:
    # batch=8, seq_len=8, input_size=16, hidden_layer_size=32, output_size=1.
    B, T, D, H = 8, 8, 16, 32

    key = jax.random.PRNGKey(0)
    k_x, k_p = jax.random.split(key)
    x = jax.random.normal(k_x, (B, T, D), jnp.float32)
    params = init_params(k_p, input_size=D, hidden_size=H, output_size=1)

    out = bilstm_model_forward(x, params)
    out = jax.block_until_ready(out)
    assert out.shape == (B, 1), out.shape
    print("KERNEL_OK")
</pallas_src>

<mosaic_0001>
module attributes {stable_mosaic.version = 11 : i64} {
  func.func @bilstm_last_kernel(%arg0: memref<64x16xf32, #tpu.memory_space<vmem>>, %arg1: memref<16x256xf32, #tpu.memory_space<vmem>>, %arg2: memref<32x128xf32, #tpu.memory_space<vmem>>, %arg3: memref<1x256xf32, #tpu.memory_space<vmem>>, %arg4: memref<1x64xf32, #tpu.memory_space<vmem>>, %arg5: memref<1x1xf32, #tpu.memory_space<vmem>>, %arg6: memref<8x1xf32, #tpu.memory_space<vmem>>) attributes {dimension_semantics = [], scalar_prefetch = 0 : i64, scratch_operands = 0 : i64, tpu.core_type = #tpu.core_type<tc>} {
    %c0 = arith.constant 0 : index
    %c0_0 = arith.constant 0 : index
    %0 = vector.load %arg2[%c0, %c0_0] : memref<32x128xf32, #tpu.memory_space<vmem>>, vector<32x128xf32>
    %c0_1 = arith.constant 0 : index
    %c0_2 = arith.constant 0 : index
    %1 = vector.load %arg0[%c0_1, %c0_2] : memref<64x16xf32, #tpu.memory_space<vmem>>, vector<64x16xf32>
    %c0_3 = arith.constant 0 : index
    %c0_4 = arith.constant 0 : index
    %2 = vector.load %arg1[%c0_3, %c0_4] : memref<16x256xf32, #tpu.memory_space<vmem>>, vector<16x256xf32>
    %cst = arith.constant dense<0.000000e+00> : vector<64x256xf32>
    %3 = tpu.matmul %1, %2, %cst {dimension_numbers = #tpu.dot_dimension_numbers<[1], [0], [0], [1], [0, 0, 1, 1], [], []>} : vector<64x16xf32>, vector<16x256xf32>, vector<64x256xf32> -> vector<64x256xf32>
    %c0_5 = arith.constant 0 : index
    %c0_6 = arith.constant 0 : index
    %4 = vector.load %arg3[%c0_5, %c0_6] : memref<1x256xf32, #tpu.memory_space<vmem>>, vector<1x256xf32>
    %5 = vector.broadcast %4 : vector<1x256xf32> to vector<64x256xf32>
    %6 = arith.addf %3, %5 : vector<64x256xf32>
    %7 = vector.extract_strided_slice %6 {offsets = [0, 0], sizes = [8, 128], strides = [1, 1]} : vector<64x256xf32> to vector<8x128xf32>
    %8 = arith.negf %7 : vector<8x128xf32>
    %9 = math.exp %8 : vector<8x128xf32>
    %cst_7 = arith.constant 1.000000e+00 : f32
    %10 = vector.broadcast %cst_7 : f32 to vector<8x128xf32>
    %11 = arith.addf %10, %9 : vector<8x128xf32>
    %12 = arith.divf %10, %11 : vector<8x128xf32>
    %13 = vector.extract_strided_slice %7 {offsets = [0, 64], sizes = [8, 32], strides = [1, 1]} : vector<8x128xf32> to vector<8x32xf32>
    %14 = math.tanh %13 : vector<8x32xf32>
    %15 = vector.extract_strided_slice %12 {offsets = [0, 0], sizes = [8, 32], strides = [1, 1]} : vector<8x128xf32> to vector<8x32xf32>
    %16 = vector.extract_strided_slice %12 {offsets = [0, 96], sizes = [8, 32], strides = [1, 1]} : vector<8x128xf32> to vector<8x32xf32>
    %17 = arith.mulf %15, %14 : vector<8x32xf32>
    %18 = math.tanh %17 : vector<8x32xf32>
    %19 = arith.mulf %16, %18 : vector<8x32xf32>
    %20 = vector.extract_strided_slice %6 {offsets = [8, 0], sizes = [8, 128], strides = [1, 1]} : vector<64x256xf32> to vector<8x128xf32>
    %cst_8 = arith.constant dense<0.000000e+00> : vector<8x128xf32>
    %21 = tpu.matmul %19, %0, %cst_8 {dimension_numbers = #tpu.dot_dimension_numbers<[1], [0], [0], [1], [0, 0, 1, 1], [], []>} : vector<8x32xf32>, vector<32x128xf32>, vector<8x128xf32> -> vector<8x128xf32>
    %22 = arith.addf %20, %21 : vector<8x128xf32>
    %23 = arith.negf %22 : vector<8x128xf32>
    %24 = math.exp %23 : vector<8x128xf32>
    %cst_9 = arith.constant 1.000000e+00 : f32
    %25 = vector.broadcast %cst_9 : f32 to vector<8x128xf32>
    %26 = arith.addf %25, %24 : vector<8x128xf32>
    %27 = arith.divf %25, %26 : vector<8x128xf32>
    %28 = vector.extract_strided_slice %22 {offsets = [0, 64], sizes = [8, 32], strides = [1, 1]} : vector<8x128xf32> to vector<8x32xf32>
    %29 = math.tanh %28 : vector<8x32xf32>
    %30 = vector.extract_strided_slice %27 {offsets = [0, 0], sizes = [8, 32], strides = [1, 1]} : vector<8x128xf32> to vector<8x32xf32>
    %31 = vector.extract_strided_slice %27 {offsets = [0, 32], sizes = [8, 32], strides = [1, 1]} : vector<8x128xf32> to vector<8x32xf32>
    %32 = vector.extract_strided_slice %27 {offsets = [0, 96], sizes = [8, 32], strides = [1, 1]} : vector<8x128xf32> to vector<8x32xf32>
    %33 = arith.mulf %31, %17 : vector<8x32xf32>
    %34 = arith.mulf %30, %29 : vector<8x32xf32>
    %35 = arith.addf %33, %34 : vector<8x32xf32>
    %36 = math.tanh %35 : vector<8x32xf32>
    %37 = arith.mulf %32, %36 : vector<8x32xf32>
    %38 = vector.extract_strided_slice %6 {offsets = [16, 0], sizes = [8, 128], strides = [1, 1]} : vector<64x256xf32> to vector<8x128xf32>
    %cst_10 = arith.constant dense<0.000000e+00> : vector<8x128xf32>
    %39 = tpu.matmul %37, %0, %cst_10 {dimension_numbers = #tpu.dot_dimension_numbers<[1], [0], [0], [1], [0, 0, 1, 1], [], []>} : vector<8x32xf32>, vector<32x128xf32>, vector<8x128xf32> -> vector<8x128xf32>
    %40 = arith.addf %38, %39 : vector<8x128xf32>
    %41 = arith.negf %40 : vector<8x128xf32>
    %42 = math.exp %41 : vector<8x128xf32>
    %cst_11 = arith.constant 1.000000e+00 : f32
    %43 = vector.broadcast %cst_11 : f32 to vector<8x128xf32>
    %44 = arith.addf %43, %42 : vector<8x128xf32>
    %45 = arith.divf %43, %44 : vector<8x128xf32>
    %46 = vector.extract_strided_slice %40 {offsets = [0, 64], sizes = [8, 32], strides = [1, 1]} : vector<8x128xf32> to vector<8x32xf32>
    %47 = math.tanh %46 : vector<8x32xf32>
    %48 = vector.extract_strided_slice %45 {offsets = [0, 0], sizes = [8, 32], strides = [1, 1]} : vector<8x128xf32> to vector<8x32xf32>
    %49 = vector.extract_strided_slice %45 {offsets = [0, 32], sizes = [8, 32], strides = [1, 1]} : vector<8x128xf32> to vector<8x32xf32>
    %50 = vector.extract_strided_slice %45 {offsets = [0, 96], sizes = [8, 32], strides = [1, 1]} : vector<8x128xf32> to vector<8x32xf32>
    %51 = arith.mulf %49, %35 : vector<8x32xf32>
    %52 = arith.mulf %48, %47 : vector<8x32xf32>
    %53 = arith.addf %51, %52 : vector<8x32xf32>
    %54 = math.tanh %53 : vector<8x32xf32>
    %55 = arith.mulf %50, %54 : vector<8x32xf32>
    %56 = vector.extract_strided_slice %6 {offsets = [24, 0], sizes = [8, 128], strides = [1, 1]} : vector<64x256xf32> to vector<8x128xf32>
    %cst_12 = arith.constant dense<0.000000e+00> : vector<8x128xf32>
    %57 = tpu.matmul %55, %0, %cst_12 {dimension_numbers = #tpu.dot_dimension_numbers<[1], [0], [0], [1], [0, 0, 1, 1], [], []>} : vector<8x32xf32>, vector<32x128xf32>, vector<8x128xf32> -> vector<8x128xf32>
    %58 = arith.addf %56, %57 : vector<8x128xf32>
    %59 = arith.negf %58 : vector<8x128xf32>
    %60 = math.exp %59 : vector<8x128xf32>
    %cst_13 = arith.constant 1.000000e+00 : f32
    %61 = vector.broadcast %cst_13 : f32 to vector<8x128xf32>
    %62 = arith.addf %61, %60 : vector<8x128xf32>
    %63 = arith.divf %61, %62 : vector<8x128xf32>
    %64 = vector.extract_strided_slice %58 {offsets = [0, 64], sizes = [8, 32], strides = [1, 1]} : vector<8x128xf32> to vector<8x32xf32>
    %65 = math.tanh %64 : vector<8x32xf32>
    %66 = vector.extract_strided_slice %63 {offsets = [0, 0], sizes = [8, 32], strides = [1, 1]} : vector<8x128xf32> to vector<8x32xf32>
    %67 = vector.extract_strided_slice %63 {offsets = [0, 32], sizes = [8, 32], strides = [1, 1]} : vector<8x128xf32> to vector<8x32xf32>
    %68 = vector.extract_strided_slice %63 {offsets = [0, 96], sizes = [8, 32], strides = [1, 1]} : vector<8x128xf32> to vector<8x32xf32>
    %69 = arith.mulf %67, %53 : vector<8x32xf32>
    %70 = arith.mulf %66, %65 : vector<8x32xf32>
    %71 = arith.addf %69, %70 : vector<8x32xf32>
    %72 = math.tanh %71 : vector<8x32xf32>
    %73 = arith.mulf %68, %72 : vector<8x32xf32>
    %74 = vector.extract_strided_slice %6 {offsets = [32, 0], sizes = [8, 128], strides = [1, 1]} : vector<64x256xf32> to vector<8x128xf32>
    %cst_14 = arith.constant dense<0.000000e+00> : vector<8x128xf32>
    %75 = tpu.matmul %73, %0, %cst_14 {dimension_numbers = #tpu.dot_dimension_numbers<[1], [0], [0], [1], [0, 0, 1, 1], [], []>} : vector<8x32xf32>, vector<32x128xf32>, vector<8x128xf32> -> vector<8x128xf32>
    %76 = arith.addf %74, %75 : vector<8x128xf32>
    %77 = arith.negf %76 : vector<8x128xf32>
    %78 = math.exp %77 : vector<8x128xf32>
    %cst_15 = arith.constant 1.000000e+00 : f32
    %79 = vector.broadcast %cst_15 : f32 to vector<8x128xf32>
    %80 = arith.addf %79, %78 : vector<8x128xf32>
    %81 = arith.divf %79, %80 : vector<8x128xf32>
    %82 = vector.extract_strided_slice %76 {offsets = [0, 64], sizes = [8, 32], strides = [1, 1]} : vector<8x128xf32> to vector<8x32xf32>
    %83 = math.tanh %82 : vector<8x32xf32>
    %84 = vector.extract_strided_slice %81 {offsets = [0, 0], sizes = [8, 32], strides = [1, 1]} : vector<8x128xf32> to vector<8x32xf32>
    %85 = vector.extract_strided_slice %81 {offsets = [0, 32], sizes = [8, 32], strides = [1, 1]} : vector<8x128xf32> to vector<8x32xf32>
    %86 = vector.extract_strided_slice %81 {offsets = [0, 96], sizes = [8, 32], strides = [1, 1]} : vector<8x128xf32> to vector<8x32xf32>
    %87 = arith.mulf %85, %71 : vector<8x32xf32>
    %88 = arith.mulf %84, %83 : vector<8x32xf32>
    %89 = arith.addf %87, %88 : vector<8x32xf32>
    %90 = math.tanh %89 : vector<8x32xf32>
    %91 = arith.mulf %86, %90 : vector<8x32xf32>
    %92 = vector.extract_strided_slice %6 {offsets = [40, 0], sizes = [8, 128], strides = [1, 1]} : vector<64x256xf32> to vector<8x128xf32>
    %cst_16 = arith.constant dense<0.000000e+00> : vector<8x128xf32>
    %93 = tpu.matmul %91, %0, %cst_16 {dimension_numbers = #tpu.dot_dimension_numbers<[1], [0], [0], [1], [0, 0, 1, 1], [], []>} : vector<8x32xf32>, vector<32x128xf32>, vector<8x128xf32> -> vector<8x128xf32>
    %94 = arith.addf %92, %93 : vector<8x128xf32>
    %95 = arith.negf %94 : vector<8x128xf32>
    %96 = math.exp %95 : vector<8x128xf32>
    %cst_17 = arith.constant 1.000000e+00 : f32
    %97 = vector.broadcast %cst_17 : f32 to vector<8x128xf32>
    %98 = arith.addf %97, %96 : vector<8x128xf32>
    %99 = arith.divf %97, %98 : vector<8x128xf32>
    %100 = vector.extract_strided_slice %94 {offsets = [0, 64], sizes = [8, 32], strides = [1, 1]} : vector<8x128xf32> to vector<8x32xf32>
    %101 = math.tanh %100 : vector<8x32xf32>
    %102 = vector.extract_strided_slice %99 {offsets = [0, 0], sizes = [8, 32], strides = [1, 1]} : vector<8x128xf32> to vector<8x32xf32>
    %103 = vector.extract_strided_slice %99 {offsets = [0, 32], sizes = [8, 32], strides = [1, 1]} : vector<8x128xf32> to vector<8x32xf32>
    %104 = vector.extract_strided_slice %99 {offsets = [0, 96], sizes = [8, 32], strides = [1, 1]} : vector<8x128xf32> to vector<8x32xf32>
    %105 = arith.mulf %103, %89 : vector<8x32xf32>
    %106 = arith.mulf %102, %101 : vector<8x32xf32>
    %107 = arith.addf %105, %106 : vector<8x32xf32>
    %108 = math.tanh %107 : vector<8x32xf32>
    %109 = arith.mulf %104, %108 : vector<8x32xf32>
    %110 = vector.extract_strided_slice %6 {offsets = [48, 0], sizes = [8, 128], strides = [1, 1]} : vector<64x256xf32> to vector<8x128xf32>
    %cst_18 = arith.constant dense<0.000000e+00> : vector<8x128xf32>
    %111 = tpu.matmul %109, %0, %cst_18 {dimension_numbers = #tpu.dot_dimension_numbers<[1], [0], [0], [1], [0, 0, 1, 1], [], []>} : vector<8x32xf32>, vector<32x128xf32>, vector<8x128xf32> -> vector<8x128xf32>
    %112 = arith.addf %110, %111 : vector<8x128xf32>
    %113 = arith.negf %112 : vector<8x128xf32>
    %114 = math.exp %113 : vector<8x128xf32>
    %cst_19 = arith.constant 1.000000e+00 : f32
    %115 = vector.broadcast %cst_19 : f32 to vector<8x128xf32>
    %116 = arith.addf %115, %114 : vector<8x128xf32>
    %117 = arith.divf %115, %116 : vector<8x128xf32>
    %118 = vector.extract_strided_slice %112 {offsets = [0, 64], sizes = [8, 32], strides = [1, 1]} : vector<8x128xf32> to vector<8x32xf32>
    %119 = math.tanh %118 : vector<8x32xf32>
    %120 = vector.extract_strided_slice %117 {offsets = [0, 0], sizes = [8, 32], strides = [1, 1]} : vector<8x128xf32> to vector<8x32xf32>
    %121 = vector.extract_strided_slice %117 {offsets = [0, 32], sizes = [8, 32], strides = [1, 1]} : vector<8x128xf32> to vector<8x32xf32>
    %122 = vector.extract_strided_slice %117 {offsets = [0, 96], sizes = [8, 32], strides = [1, 1]} : vector<8x128xf32> to vector<8x32xf32>
    %123 = arith.mulf %121, %107 : vector<8x32xf32>
    %124 = arith.mulf %120, %119 : vector<8x32xf32>
    %125 = arith.addf %123, %124 : vector<8x32xf32>
    %126 = math.tanh %125 : vector<8x32xf32>
    %127 = arith.mulf %122, %126 : vector<8x32xf32>
    %128 = vector.extract_strided_slice %6 {offsets = [56, 0], sizes = [8, 128], strides = [1, 1]} : vector<64x256xf32> to vector<8x128xf32>
    %cst_20 = arith.constant dense<0.000000e+00> : vector<8x128xf32>
    %129 = tpu.matmul %127, %0, %cst_20 {dimension_numbers = #tpu.dot_dimension_numbers<[1], [0], [0], [1], [0, 0, 1, 1], [], []>} : vector<8x32xf32>, vector<32x128xf32>, vector<8x128xf32> -> vector<8x128xf32>
    %130 = arith.addf %128, %129 : vector<8x128xf32>
    %131 = arith.negf %130 : vector<8x128xf32>
    %132 = math.exp %131 : vector<8x128xf32>
    %cst_21 = arith.constant 1.000000e+00 : f32
    %133 = vector.broadcast %cst_21 : f32 to vector<8x128xf32>
    %134 = arith.addf %133, %132 : vector<8x128xf32>
    %135 = arith.divf %133, %134 : vector<8x128xf32>
    %136 = vector.extract_strided_slice %130 {offsets = [0, 64], sizes = [8, 32], strides = [1, 1]} : vector<8x128xf32> to vector<8x32xf32>
    %137 = math.tanh %136 : vector<8x32xf32>
    %138 = vector.extract_strided_slice %135 {offsets = [0, 0], sizes = [8, 32], strides = [1, 1]} : vector<8x128xf32> to vector<8x32xf32>
    %139 = vector.extract_strided_slice %135 {offsets = [0, 32], sizes = [8, 32], strides = [1, 1]} : vector<8x128xf32> to vector<8x32xf32>
    %140 = vector.extract_strided_slice %135 {offsets = [0, 96], sizes = [8, 32], strides = [1, 1]} : vector<8x128xf32> to vector<8x32xf32>
    %141 = arith.mulf %139, %125 : vector<8x32xf32>
    %142 = arith.mulf %138, %137 : vector<8x32xf32>
    %143 = arith.addf %141, %142 : vector<8x32xf32>
    %144 = math.tanh %143 : vector<8x32xf32>
    %145 = arith.mulf %140, %144 : vector<8x32xf32>
    %146 = vector.extract_strided_slice %6 {offsets = [56, 128], sizes = [8, 128], strides = [1, 1]} : vector<64x256xf32> to vector<8x128xf32>
    %147 = arith.negf %146 : vector<8x128xf32>
    %148 = math.exp %147 : vector<8x128xf32>
    %cst_22 = arith.constant 1.000000e+00 : f32
    %149 = vector.broadcast %cst_22 : f32 to vector<8x128xf32>
    %150 = arith.addf %149, %148 : vector<8x128xf32>
    %151 = arith.divf %149, %150 : vector<8x128xf32>
    %152 = vector.extract_strided_slice %146 {offsets = [0, 64], sizes = [8, 32], strides = [1, 1]} : vector<8x128xf32> to vector<8x32xf32>
    %153 = math.tanh %152 : vector<8x32xf32>
    %154 = vector.extract_strided_slice %151 {offsets = [0, 0], sizes = [8, 32], strides = [1, 1]} : vector<8x128xf32> to vector<8x32xf32>
    %155 = vector.extract_strided_slice %151 {offsets = [0, 96], sizes = [8, 32], strides = [1, 1]} : vector<8x128xf32> to vector<8x32xf32>
    %156 = arith.mulf %154, %153 : vector<8x32xf32>
    %157 = math.tanh %156 : vector<8x32xf32>
    %158 = arith.mulf %155, %157 : vector<8x32xf32>
    %c0_23 = arith.constant 0 : index
    %c0_24 = arith.constant 0 : index
    %159 = vector.load %arg4[%c0_23, %c0_24] : memref<1x64xf32, #tpu.memory_space<vmem>>, vector<1x64xf32>
    %160 = vector.extract_strided_slice %159 {offsets = [0, 0], sizes = [1, 32], strides = [1, 1]} : vector<1x64xf32> to vector<1x32xf32>
    %161 = vector.broadcast %160 : vector<1x32xf32> to vector<8x32xf32>
    %162 = arith.mulf %145, %161 : vector<8x32xf32>
    %163 = vector.extract_strided_slice %159 {offsets = [0, 32], sizes = [1, 32], strides = [1, 1]} : vector<1x64xf32> to vector<1x32xf32>
    %164 = vector.broadcast %163 : vector<1x32xf32> to vector<8x32xf32>
    %165 = arith.mulf %158, %164 : vector<8x32xf32>
    %166 = arith.addf %162, %165 : vector<8x32xf32>
    %cst_25 = arith.constant dense<0.000000e+00> : vector<8xf32>
    %167 = vector.multi_reduction <add>, %166, %cst_25 [1] : vector<8x32xf32> to vector<8xf32>
    %168 = vector.shape_cast %167 : vector<8xf32> to vector<8x1xf32>
    %c0_26 = arith.constant 0 : index
    %c0_27 = arith.constant 0 : index
    %169 = vector.load %arg5[%c0_26, %c0_27] : memref<1x1xf32, #tpu.memory_space<vmem>>, vector<1x1xf32>
    %170 = vector.broadcast %169 : vector<1x1xf32> to vector<8x1xf32>
    %171 = arith.addf %168, %170 : vector<8x1xf32>
    %c0_28 = arith.constant 0 : index
    %c0_29 = arith.constant 0 : index
    %172 = vector.load %arg6[%c0_28, %c0_29] : memref<8x1xf32, #tpu.memory_space<vmem>>, vector<8x1xf32>
    tpu.vector_store %arg6[%c0_28, %c0_29], %171 {strides = array<i32>} : memref<8x1xf32, #tpu.memory_space<vmem>>, vector<8x1xf32>,
    return
  }
}

</mosaic_0001>

<bundles_post_ra>
// kernel: bilstm_model_forward.1
= control target key start
LH: loop header
LB: loop body
LE: loop exit
PB: predicated region body
PF: predicated region fallthrough
CT: control target
= control target key end

     0   :  { %v1236_v3 = vmov 0.0   ;;  %vm53_vm0 = vcmask 130048   ;;  %v43_v8 = vlaneseq  ;;  %v1238_v24 = vmov 0.0|0.0   ;;  %s1240_s21 = smov 96   ;;  %s1241_s24 = smov 32   ;;  %s1479_s1 = inlined_call_operand.vmem [shape: f32[16,256], index: 1, kind: input, shape index: {}]   ;;  %s1480_s0 = inlined_call_operand.vmem [shape: f32[64,16], index: 0, kind: input, shape index: {}]   ;;  %s1481_s3 = inlined_call_operand.vmem [shape: f32[1,256], index: 3, kind: input, shape index: {}]   ;;  %s1482_s2 = inlined_call_operand.vmem [shape: f32[32,128], index: 2, kind: input, shape index: {}]   ;;  %s1483_s4 = inlined_call_operand.vmem [shape: f32[1,64], index: 4, kind: input, shape index: {}]   ;;  %s1484_s5 = inlined_call_operand.<no memory space> [shape: f32[1,1], index: 5, kind: input, shape index: {}]   ;;  %s1485_s6 = inlined_call_operand.vmem [shape: f32[8,1], index: 6, kind: output, shape index: {}]  }
   0x1   :  { %v38_v0 = vld [vmem:[%s1479_s1 + $0x8] sm:$0xff]  ;;  %v40_v1 = vld [vmem:[%s1479_s1 + $0x18] sm:$0xff]  ;;  %v37_v2 = vld [vmem:[%s1479_s1] sm:$0xff]  ;;  %142 = vmatprep.mubr.f32.mxu1 %v1236_v3  ;;  %1109 = vmatprep.subr.bf16.mxu0 %v1238_v24  ;;  %vm1239_vm1 = vmmov 0   ;;  %vm205_vm2 = vcmask 261120   ;;  %vm955_vm3 = vcmask 7168  }
   0x2   :  { %v1099_v4 = vpack.c.bf16 %v40_v1, %v38_v0  ;;  %v39_v5 = vld [vmem:[%s1479_s1 + $0x10] sm:$0xff]  ;;  %v29_v7 = vld [vmem:[%s1480_s0] sm:$0xff]  ;;  %v1295_v9 = vshrl.u32 %v43_v8, 7  ;;  %s1237_s1 = smov 64   ;;  %v30_v23 = vld [vmem:[%s1480_s0 + $0x8] sm:$0xff]  ;;  %1041 = vmatprep.mubr.msk.f32.mxu0 %vm1239_vm1, %v1236_v3 }
   0x3   :  { %v1101_v6 = vpack.c.bf16 %v39_v5, %v37_v2  ;;  %v1301_v11 = vld [vmem:[%s1481_s3] sm:$0x3]  ;;  %v26_v26 = vld [vmem:[%s1482_s2 + $0x8] sm:$0xff]  ;;  %v31_v28 = vld [vmem:[%s1480_s0 + $0x10] sm:$0xff] }
   0x4   :  { %1100 = vmatprep.subr.bf16.mxu1 %v1099_v4  ;;  %v45_v10 = vsub.s32 0, %v1295_v9  ;;  %v25_v25 = vld [vmem:[%s1482_s2] sm:$0xff]  ;;  %v27_v29 = vld [vmem:[%s1482_s2 + $0x10] sm:$0xff]  ;;  %v28_v30 = vld [vmem:[%s1482_s2 + $0x18] sm:$0xff] }
   0x5   :  { %1102 = vmatpush1.bf16.msra.mxu1 %v1101_v6  ;;  %v1319_v27 = vpack.c.bf16 %v26_v26, %v25_v25  ;;  %v1335_v31 = vpack.c.bf16 %v28_v30, %v27_v29  ;;  %v32_v32 = vld [vmem:[%s1480_s0 + $0x18] sm:$0xff]  ;;  %v33_v34 = vld [vmem:[%s1480_s0 + $0x20] sm:$0xff]  ;;  %v34_v35 = vld [vmem:[%s1480_s0 + $0x28] sm:$0xff] }
   0x6   :  { %v1304_v12 = vrot.slane %v1301_v11, %v45_v10  ;;  %1103 = vmatprep.subr.bf16.mxu1 %v1238_v24  ;;  %v35_v36 = vld [vmem:[%s1480_s0 + $0x30] sm:$0xff]  ;;  %v36_v37 = vld [vmem:[%s1480_s0 + $0x38] sm:$0xff] }
   0x7   :  { %1111 = vmatpush3.bf16.msra.mxu0 %v1319_v27 }
   0x8   :  { %961 = vmatmul.mubr.msk.f32.vlgmr.msra.gmra.mrb[0].mxu1 %vm53_vm0, %v29_v7  ;;  %1112 = vmatprep.subr.bf16.mxu0 %v1238_v24 }
   0x9   :  { %147 = vmatprep.mubr.f32.mxu1 %v1236_v3  ;;  %1105 = vmatpush3.bf16.msra.mxu1 %v1319_v27 }
   0xa   :  { %1106 = vmatprep.subr.bf16.mxu1 %v1238_v24 }
   0xb   :  { %1114 = vmatpush3.bf16.msra.mxu0 %v1335_v31 }
   0xc   :  { %962 = vmatmul.mubr.msk.f32.gmra.mrb[2].mxu1 %vm53_vm0, %v30_v23  ;;  %1115 = vmatprep.subr.bf16.mxu0 %v1238_v24 }
   0xd   :  { %152 = vmatprep.mubr.f32.mxu1 %v1236_v3  ;;  %1108 = vmatpush3.bf16.msra.mxu1 %v1335_v31 }
   0xe   :  { %1139 = vmatprep.subr.bf16.mxu1 %v1238_v24 }
  0x10   :  { %963 = vmatmul.mubr.msk.f32.gmra.mrb[4].mxu1 %vm53_vm0, %v31_v28 }
  0x11   :  { %157 = vmatprep.mubr.f32.mxu1 %v1236_v3 }
  0x14   :  { %964 = vmatmul.mubr.msk.f32.gmra.mrb[6].mxu1 %vm53_vm0, %v32_v32 }
  0x15   :  { %162 = vmatprep.mubr.f32.mxu1 %v1236_v3 }
  0x18   :  { %965 = vmatmul.mubr.msk.f32.gmra.mrb[8].mxu1 %vm53_vm0, %v33_v34 }
  0x19   :  { %167 = vmatprep.mubr.f32.mxu1 %v1236_v3 }
  0x1c   :  { %966 = vmatmul.mubr.msk.f32.gmra.mrb[10].mxu1 %vm53_vm0, %v34_v35 }
  0x1d   :  { %172 = vmatprep.mubr.f32.mxu1 %v1236_v3 }
  0x20   :  { %967 = vmatmul.mubr.msk.f32.gmra.mrb[12].mxu1 %vm53_vm0, %v35_v36 }
  0x21   :  { %177 = vmatprep.mubr.f32.mxu1 %v1236_v3 }
  0x24   :  { %968 = vmatmul.mubr.msk.f32.gmra.mrb[14].mxu1 %vm53_vm0, %v36_v37 }
  0x25   :  { %1030 = vmatprep.mubr.msk.f32.mxu1 %vm1239_vm1, %v1236_v3 }
  0xdb   :  { %v144_v13 = vpop.f32.mrb[0].mxu1 }
  0xdc   :  { %v145_v14 = vadd.f32 %v144_v13, %v1304_v12  ;;  %v146_v15 = vpop.f32.mrb[1].mxu1 }
  0xde   :  { %1164 = vtanh.f32 %v145_v14  ;;  %v969_v17 = vmul.f32 -1.442695, %v145_v14 }
  0xe0   :  { %1166 = vpow2.f32 %v969_v17 }
  0xe3   :  { %v154_v40 = vpop.f32.mrb[4].mxu1 }
  0xe4   :  { %v156_v41 = vpop.f32.mrb[5].mxu1  ;;  %v155_v8 = vadd.f32 %v154_v40, %v1304_v12 }
  0xe7   :  { %v1375_v42 = vpop.f32.mrb[6].mxu1 }
  0xe8   :  { %v1165_v16 = vpop.eup %1164  ;;  %v161_v43 = vpop.f32.mrb[7].mxu1  ;;  %v160_v32 = vadd.f32 %v1375_v42, %v1304_v12 }
  0xe9   :  { %192 = vrot.lane.b32.xlu0 %v1165_v16, %s1237_s1 }
  0xea   :  { %v1167_v18 = vpop.eup %1166 }
  0xeb   :  { %v187_v19 = vadd.f32 1.0, %v1167_v18  ;;  %v1377_v44 = vpop.f32.mrb[8].mxu1 }
  0xec   :  { %v166_v45 = vpop.f32.mrb[9].mxu1 }
  0xed   :  { %1168 = vrcp.f32 %v187_v19 }
  0xef   :  { %v1379_v46 = vpop.f32.mrb[10].mxu1 }
  0xf0   :  { %v171_v47 = vpop.f32.mrb[11].mxu1 }
  0xf3   :  { %v1381_v48 = vpop.f32.mrb[12].mxu1 }
  0xf4   :  { %v176_v49 = vpop.f32.mrb[13].mxu1 }
  0xf7   :  { %v1169_v20 = vpop.eup %1168  ;;  %v1383_v50 = vpop.f32.mrb[14].mxu1 }
  0xf8   :  { %v1385_v51 = vpop.f32.mrb[15].mxu1 }
 0x15b   :  { %v193_v21 = vpop.permute.xlu0 %192 }
 0x15c   :  { %v195_v22 = vmul.f32 %v1169_v20, %v193_v21 }
 0x15e   :  { %1170 = vtanh.f32 %v195_v22 }
 0x168   :  { %v1171_v33 = vpop.eup %1170 }
 0x169   :  { %198 = vrot.lane.b32.xlu0 %v1171_v33, %s1240_s21 }
 0x16d   :  { %287 = vrot.lane.b32.xlu0 %v195_v22, %s1241_s24 }
 0x1db   :  { %v199_v38 = vpop.permute.xlu0 %198 }
 0x1dc   :  { %v201_v39 = vmul.f32 %v1169_v20, %v199_v38 }
 0x1de   :  { %203 = vrot.lane.b32.xlu1 %v201_v39, %s1241_s24 }
 0x1df   :  { %v288_v63 = vpop.permute.xlu0 %287 }
 0x250   :  { %v204_v52 = vpop.permute.xlu1 %203 }
 0x251   :  { %1031 = vmatmul.mubr.msk.f32.vlgmr.msra.gmra.mrb[2].mxu1 %vm205_vm2, %v204_v52 }
 0x252   :  { %1141 = vmatpush3.bf16.msra.mxu1 %v1319_v27  ;;  %1096 = vmatprep.mubr.msk.f32.mxu1 %vm1239_vm1, %v1236_v3 }
 0x253   :  { %1142 = vmatprep.subr.bf16.mxu1 %v1238_v24 }
 0x256   :  { %1144 = vmatpush3.bf16.msra.mxu1 %v1335_v31 }
 0x324   :  { %v274_v53 = vpop.f32.mrb[2].mxu1 }
 0x325   :  { %v1145_v54 = vadd.f32 %v274_v53, %v1304_v12  ;;  %v1032_v55 = vpop.f32.mrb[3].mxu1 }
 0x326   :  { %v165_v55 = vadd.f32 %v1377_v44, %v1304_v12 }
 0x327   :  { %1172 = vtanh.f32 %v1145_v54  ;;  %v971_v57 = vmul.f32 -1.442695, %v1145_v54 }
 0x329   :  { %1174 = vpow2.f32 %v971_v57 }
 0x331   :  { %v1173_v56 = vpop.eup %1172 }
 0x332   :  { %292 = vrot.lane.b32.xlu1 %v1173_v56, %s1237_s1 }
 0x333   :  { %v1175_v58 = vpop.eup %1174 }
 0x334   :  { %v282_v59 = vadd.f32 1.0, %v1175_v58 }
 0x336   :  { %1176 = vrcp.f32 %v282_v59 }
 0x340   :  { %v1177_v60 = vpop.eup %1176 }
 0x341   :  { %v290_v0 = vmul.f32 %v1177_v60, %v288_v63 }
 0x3a4   :  { %v293_v61 = vpop.permute.xlu1 %292 }
 0x3a5   :  { %v295_v62 = vmul.f32 %v1177_v60, %v293_v61 }
 0x3a7   :  { %297 = vrot.lane.b32.xlu1 %v295_v62, %s1241_s24 }
 0x419   :  { %v298_v1 = vpop.permute.xlu1 %297 }
 0x41a   :  { %v300_v2 = vadd.f32 %v298_v1, %v290_v0 }
 0x41c   :  { %1178 = vtanh.f32 %v300_v2 }
 0x426   :  { %v1179_v4 = vpop.eup %1178 }
 0x427   :  { %303 = vrot.lane.b32.xlu0 %v1179_v4, %s1237_s1 }
 0x499   :  { %v304_v5 = vpop.permute.xlu0 %303 }
 0x49a   :  { %v306_v6 = vmul.f32 %v1177_v60, %v304_v5 }
 0x49c   :  { %308 = vrot.lane.b32.xlu1 %v306_v6, %s1241_s24 }
 0x50e   :  { %v309_v7 = vpop.permute.xlu1 %308 }
 0x50f   :  { %1042 = vmatmul.mubr.msk.f32.vlgmr.msra.gmra.mrb[0].mxu0 %vm205_vm2, %v309_v7 }
 0x510   :  { %1117 = vmatpush3.bf16.msra.mxu0 %v1319_v27  ;;  %1052 = vmatprep.mubr.msk.f32.mxu0 %vm1239_vm1, %v1236_v3 }
 0x511   :  { %1118 = vmatprep.subr.bf16.mxu0 %v1238_v24 }
 0x514   :  { %1120 = vmatpush3.bf16.msra.mxu0 %v1335_v31 }
 0x515   :  { %1121 = vmatprep.subr.bf16.mxu0 %v1238_v24 }
 0x5e2   :  { %v378_v10 = vpop.f32.mrb[0].mxu0 }
 0x5e3   :  { %v382_v13 = vadd.f32 %v378_v10, %v155_v8  ;;  %v1043_v14 = vpop.f32.mrb[1].mxu0  ;;  %v170_v10 = vadd.f32 %v1379_v46, %v1304_v12 }
 0x5e5   :  { %1180 = vtanh.f32 %v382_v13  ;;  %v973_v16 = vmul.f32 -1.442695, %v382_v13 }
 0x5e7   :  { %1182 = vpow2.f32 %v973_v16 }
 0x5ef   :  { %v1181_v15 = vpop.eup %1180 }
 0x5f0   :  { %392 = vrot.lane.b32.xlu0 %v1181_v15, %s1237_s1 }
 0x5f1   :  { %v1183_v17 = vpop.eup %1182 }
 0x5f2   :  { %v386_v18 = vadd.f32 1.0, %v1183_v17 }
 0x5f4   :  { %1184 = vrcp.f32 %v386_v18 }
 0x5fe   :  { %v1185_v19 = vpop.eup %1184 }
 0x5ff   :  { %v390_v22 = vmul.f32 %v1185_v19, %v300_v2 }
 0x662   :  { %v393_v20 = vpop.permute.xlu0 %392 }
 0x663   :  { %v395_v21 = vmul.f32 %v1185_v19, %v393_v20 }
 0x665   :  { %397 = vrot.lane.b32.xlu1 %v395_v21, %s1241_s24 }
 0x6d7   :  { %v398_v23 = vpop.permute.xlu1 %397 }
 0x6d8   :  { %v400_v25 = vadd.f32 %v398_v23, %v390_v22 }
 0x6da   :  { %1186 = vtanh.f32 %v400_v25 }
 0x6e4   :  { %v1187_v26 = vpop.eup %1186 }
 0x6e5   :  { %403 = vrot.lane.b32.xlu0 %v1187_v26, %s1237_s1  ;;  %v175_v26 = vadd.f32 %v1381_v48, %v1304_v12 }
 0x757   :  { %v404_v28 = vpop.permute.xlu0 %403 }
 0x758   :  { %v406_v29 = vmul.f32 %v1185_v19, %v404_v28 }
 0x75a   :  { %408 = vrot.lane.b32.xlu1 %v406_v29, %s1241_s24 }
 0x7cc   :  { %v409_v30 = vpop.permute.xlu1 %408 }
 0x7cd   :  { %1053 = vmatmul.mubr.msk.f32.vlgmr.msra.gmra.mrb[2].mxu0 %vm205_vm2, %v409_v30 }
 0x7ce   :  { %1123 = vmatpush3.bf16.msra.mxu0 %v1319_v27  ;;  %1063 = vmatprep.mubr.msk.f32.mxu0 %vm1239_vm1, %v1236_v3 }
 0x7cf   :  { %1124 = vmatprep.subr.bf16.mxu0 %v1238_v24 }
 0x7d2   :  { %1126 = vmatpush3.bf16.msra.mxu0 %v1335_v31 }
 0x7d3   :  { %1127 = vmatprep.subr.bf16.mxu0 %v1238_v24 }
 0x8a0   :  { %v478_v33 = vpop.f32.mrb[2].mxu0 }
 0x8a1   :  { %v482_v34 = vadd.f32 %v478_v33, %v160_v32  ;;  %v1054_v35 = vpop.f32.mrb[3].mxu0 }
 0x8a3   :  { %1188 = vtanh.f32 %v482_v34  ;;  %v975_v37 = vmul.f32 -1.442695, %v482_v34 }
 0x8a5   :  { %1190 = vpow2.f32 %v975_v37 }
 0x8ad   :  { %v1189_v36 = vpop.eup %1188 }
 0x8ae   :  { %492 = vrot.lane.b32.xlu0 %v1189_v36, %s1237_s1 }
 0x8af   :  { %v1191_v38 = vpop.eup %1190 }
 0x8b0   :  { %v486_v39 = vadd.f32 1.0, %v1191_v38 }
 0x8b2   :  { %1192 = vrcp.f32 %v486_v39 }
 0x8bc   :  { %v1193_v40 = vpop.eup %1192 }
 0x8bd   :  { %v490_v45 = vmul.f32 %v1193_v40, %v400_v25 }
 0x920   :  { %v493_v41 = vpop.permute.xlu0 %492 }
 0x921   :  { %v495_v43 = vmul.f32 %v1193_v40, %v493_v41 }
 0x923   :  { %497 = vrot.lane.b32.xlu1 %v495_v43, %s1241_s24 }
 0x995   :  { %v498_v47 = vpop.permute.xlu1 %497 }
 0x996   :  { %v500_v42 = vadd.f32 %v498_v47, %v490_v45 }
 0x998   :  { %1194 = vtanh.f32 %v500_v42 }
 0x9a2   :  { %v1195_v49 = vpop.eup %1194 }
 0x9a3   :  { %503 = vrot.lane.b32.xlu0 %v1195_v49, %s1237_s1  ;;  %v180_v49 = vadd.f32 %v1383_v50, %v1304_v12 }
 0xa15   :  { %v504_v52 = vpop.permute.xlu0 %503 }
 0xa16   :  { %v506_v53 = vmul.f32 %v1193_v40, %v504_v52 }
 0xa18   :  { %508 = vrot.lane.b32.xlu1 %v506_v53, %s1241_s24 }
 0xa8a   :  { %v509_v54 = vpop.permute.xlu1 %508 }
 0xa8b   :  { %1064 = vmatmul.mubr.msk.f32.vlgmr.msra.gmra.mrb[4].mxu0 %vm205_vm2, %v509_v54 }
 0xa8c   :  { %1129 = vmatpush3.bf16.msra.mxu0 %v1319_v27  ;;  %1074 = vmatprep.mubr.msk.f32.mxu0 %vm1239_vm1, %v1236_v3 }
 0xa8d   :  { %1130 = vmatprep.subr.bf16.mxu0 %v1238_v24 }
 0xa90   :  { %1132 = vmatpush3.bf16.msra.mxu0 %v1335_v31 }
 0xa91   :  { %1133 = vmatprep.subr.bf16.mxu0 %v1238_v24 }
 0xb5e   :  { %v578_v56 = vpop.f32.mrb[4].mxu0 }
 0xb5f   :  { %v582_v57 = vadd.f32 %v578_v56, %v165_v55  ;;  %v1065_v58 = vpop.f32.mrb[5].mxu0 }
 0xb61   :  { %1196 = vtanh.f32 %v582_v57  ;;  %v977_v60 = vmul.f32 -1.442695, %v582_v57 }
 0xb63   :  { %1198 = vpow2.f32 %v977_v60 }
 0xb6b   :  { %v1197_v59 = vpop.eup %1196 }
 0xb6c   :  { %592 = vrot.lane.b32.xlu0 %v1197_v59, %s1237_s1 }
 0xb6d   :  { %v1199_v61 = vpop.eup %1198 }
 0xb6e   :  { %v586_v62 = vadd.f32 1.0, %v1199_v61 }
 0xb70   :  { %1200 = vrcp.f32 %v586_v62 }
 0xb7a   :  { %v1201_v63 = vpop.eup %1200 }
 0xb7b   :  { %v590_v2 = vmul.f32 %v1201_v63, %v500_v42  ;;  %v49_v42 = vsub.s32 1, %v1295_v9 }
 0xb7d   :  { %v50_v52 = vrot.slane %v1301_v11, %v49_v42 }
 0xb7f   :  { %v182_v56 = vadd.f32 %v1385_v51, %v50_v52 }
 0xb81   :  { %v984_v9 = vmul.f32 -1.442695, %v182_v56 }
 0xbde   :  { %v593_v0 = vpop.permute.xlu0 %592 }
 0xbdf   :  { %v595_v1 = vmul.f32 %v1201_v63, %v593_v0 }
 0xbe1   :  { %597 = vrot.lane.b32.xlu1 %v595_v1, %s1241_s24 }
 0xc53   :  { %v598_v4 = vpop.permute.xlu1 %597 }
 0xc54   :  { %v600_v44 = vadd.f32 %v598_v4, %v590_v2  ;;  %v985_v4 = vld [vmem:[%s1483_s4] ss:$0 sm:$0xff] }
 0xc56   :  { %1202 = vtanh.f32 %v600_v44 }
 0xc60   :  { %v1203_v5 = vpop.eup %1202 }
 0xc61   :  { %603 = vrot.lane.b32.xlu0 %v1203_v5, %s1237_s1 }
 0xcd3   :  { %v604_v6 = vpop.permute.xlu0 %603 }
 0xcd4   :  { %v606_v7 = vmul.f32 %v1201_v63, %v604_v6 }
 0xcd6   :  { %608 = vrot.lane.b32.xlu1 %v606_v7, %s1241_s24 }
 0xd48   :  { %v609_v8 = vpop.permute.xlu1 %608 }
 0xd49   :  { %1075 = vmatmul.mubr.msk.f32.vlgmr.msra.gmra.mrb[6].mxu0 %vm205_vm2, %v609_v8 }
 0xd4a   :  { %1135 = vmatpush3.bf16.msra.mxu0 %v1319_v27  ;;  %1085 = vmatprep.mubr.msk.f32.mxu0 %vm1239_vm1, %v1236_v3 }
 0xd4b   :  { %1136 = vmatprep.subr.bf16.mxu0 %v1238_v24 }
 0xd4e   :  { %1138 = vmatpush3.bf16.msra.mxu0 %v1335_v31 }
 0xe1c   :  { %v678_v13 = vpop.f32.mrb[6].mxu0 }
 0xe1d   :  { %v682_v14 = vadd.f32 %v678_v13, %v170_v10  ;;  %v1076_v15 = vpop.f32.mrb[7].mxu0  ;;  %v11_v10 = vstv %s1484_s5 }
 0xe1e   :  { %12 = vst [vmem:[#allocation2] sm:$0x1] %v11_v10 }
 0xe1f   :  { %1204 = vtanh.f32 %v682_v14  ;;  %v979_v17 = vmul.f32 -1.442695, %v682_v14 }
 0xe21   :  { %1206 = vpow2.f32 %v979_v17 }
 0xe29   :  { %v1205_v16 = vpop.eup %1204 }
 0xe2a   :  { %692 = vrot.lane.b32.xlu0 %v1205_v16, %s1237_s1 }
 0xe2b   :  { %v1207_v27 = vpop.eup %1206 }
 0xe2c   :  { %v686_v18 = vadd.f32 1.0, %v1207_v27 }
 0xe2e   :  { %1208 = vrcp.f32 %v686_v18 }
 0xe38   :  { %v1209_v3 = vpop.eup %1208 }
 0xe39   :  { %v690_v31 = vmul.f32 %v1209_v3, %v600_v44 }
 0xe9c   :  { %v693_v19 = vpop.permute.xlu0 %692 }
 0xe9d   :  { %v695_v24 = vmul.f32 %v1209_v3, %v693_v19 }
 0xe9f   :  { %697 = vrot.lane.b32.xlu1 %v695_v24, %s1241_s24 }
 0xf11   :  { %v698_v20 = vpop.permute.xlu1 %697 }
 0xf12   :  { %v700_v46 = vadd.f32 %v698_v20, %v690_v31  ;;  %v986_v31 = vld [vmem:[#allocation2] ss:$0 sm:$0xff] }
 0xf14   :  { %1210 = vtanh.f32 %v700_v46 }
 0xf1e   :  { %v1211_v21 = vpop.eup %1210 }
 0xf1f   :  { %703 = vrot.lane.b32.xlu0 %v1211_v21, %s1237_s1 }
 0xf91   :  { %v704_v22 = vpop.permute.xlu0 %703 }
 0xf92   :  { %v706_v23 = vmul.f32 %v1209_v3, %v704_v22 }
 0xf94   :  { %708 = vrot.lane.b32.xlu1 %v706_v23, %s1241_s24 }
0x1006   :  { %v709_v25 = vpop.permute.xlu1 %708 }
0x1007   :  { %1086 = vmatmul.mubr.msk.f32.vlgmr.msra.gmra.mrb[8].mxu0 %vm205_vm2, %v709_v25 }
0x10da   :  { %v778_v28 = vpop.f32.mrb[8].mxu0 }
0x10db   :  { %v782_v29 = vadd.f32 %v778_v28, %v175_v26  ;;  %v1087_v30 = vpop.f32.mrb[9].mxu0 }
0x10dd   :  { %1212 = vtanh.f32 %v782_v29  ;;  %v981_v33 = vmul.f32 -1.442695, %v782_v29 }
0x10df   :  { %1214 = vpow2.f32 %v981_v33 }
0x10e7   :  { %v1213_v32 = vpop.eup %1212 }
0x10e8   :  { %792 = vrot.lane.b32.xlu0 %v1213_v32, %s1237_s1 }
0x10e9   :  { %v1215_v34 = vpop.eup %1214 }
0x10ea   :  { %v786_v35 = vadd.f32 1.0, %v1215_v34 }
0x10ec   :  { %1216 = vrcp.f32 %v786_v35 }
0x10f6   :  { %v1217_v36 = vpop.eup %1216 }
0x10f7   :  { %v790_v39 = vmul.f32 %v1217_v36, %v700_v46 }
0x115a   :  { %v793_v37 = vpop.permute.xlu0 %792 }
0x115b   :  { %v795_v38 = vmul.f32 %v1217_v36, %v793_v37 }
0x115d   :  { %797 = vrot.lane.b32.xlu1 %v795_v38, %s1241_s24 }
0x11cf   :  { %v798_v40 = vpop.permute.xlu1 %797 }
0x11d0   :  { %v800_v48 = vadd.f32 %v798_v40, %v790_v39 }
0x11d2   :  { %1218 = vtanh.f32 %v800_v48 }
0x11dc   :  { %v1219_v41 = vpop.eup %1218 }
0x11dd   :  { %803 = vrot.lane.b32.xlu0 %v1219_v41, %s1237_s1 }
0x124f   :  { %v804_v43 = vpop.permute.xlu0 %803 }
0x1250   :  { %v806_v45 = vmul.f32 %v1217_v36, %v804_v43 }
0x1252   :  { %808 = vrot.lane.b32.xlu1 %v806_v45, %s1241_s24 }
0x12c4   :  { %v809_v47 = vpop.permute.xlu1 %808 }
0x12c5   :  { %1097 = vmatmul.mubr.msk.f32.vlgmr.msra.gmra.mrb[16].mxu1 %vm205_vm2, %v809_v47 }
0x1398   :  { %v878_v53 = vpop.f32.mrb[16].mxu1 }
0x1399   :  { %v882_v54 = vadd.f32 %v878_v53, %v180_v49  ;;  %v1098_v55 = vpop.f32.mrb[17].mxu1 }
0x139b   :  { %1220 = vtanh.f32 %v882_v54  ;;  %v983_v59 = vmul.f32 -1.442695, %v882_v54 }
0x139c   :  { %1222 = vtanh.f32 %v182_v56 }
0x139d   :  { %1224 = vpow2.f32 %v983_v59 }
0x139e   :  { %1226 = vpow2.f32 %v984_v9 }
0x13a5   :  { %v1221_v57 = vpop.eup %1220 }
0x13a6   :  { %892 = vrot.lane.b32.xlu0 %v1221_v57, %s1237_s1  ;;  %v1223_v58 = vpop.eup %1222 }
0x13a7   :  { %v1225_v12 = vpop.eup %1224 }
0x13a8   :  { %v886_v50 = vadd.f32 1.0, %v1225_v12  ;;  %v1227_v11 = vpop.eup %1226 }
0x13a9   :  { %v910_v60 = vadd.f32 1.0, %v1227_v11 }
0x13aa   :  { %915 = vrot.lane.b32.xlu0 %v1223_v58, %s1237_s1  ;;  %1228 = vrcp.f32 %v886_v50 }
0x13ab   :  { %1230 = vrcp.f32 %v910_v60 }
0x13b4   :  { %v1229_v61 = vpop.eup %1228 }
0x13b5   :  { %v1231_v63 = vpop.eup %1230  ;;  %v890_v44 = vmul.f32 %v1229_v61, %v800_v48 }
0x1418   :  { %v893_v51 = vpop.permute.xlu0 %892 }
0x1419   :  { %v895_v62 = vmul.f32 %v1229_v61, %v893_v51 }
0x141b   :  { %897 = vrot.lane.b32.xlu1 %v895_v62, %s1241_s24 }
0x141c   :  { %v916_v0 = vpop.permute.xlu0 %915 }
0x141d   :  { %v918_v1 = vmul.f32 %v1231_v63, %v916_v0 }
0x141f   :  { %1232 = vtanh.f32 %v918_v1 }
0x1429   :  { %v1233_v2 = vpop.eup %1232 }
0x142a   :  { %921 = vrot.lane.b32.xlu0 %v1233_v2, %s1240_s21 }
0x142e   :  { %935 = vrot.lane.b32.xlu0 %v985_v4, %s1237_s1 }
0x148d   :  { %v898_v5 = vpop.permute.xlu1 %897 }
0x148e   :  { %v900_v6 = vadd.f32 %v898_v5, %v890_v44 }
0x1490   :  { %1234 = vtanh.f32 %v900_v6 }
0x149a   :  { %v1235_v7 = vpop.eup %1234 }
0x149b   :  { %903 = vrot.lane.b32.xlu1 %v1235_v7, %s1237_s1 }
0x149c   :  { %v922_v8 = vpop.permute.xlu0 %921 }
0x149d   :  { %v924_v15 = vmul.f32 %v1231_v63, %v922_v8 }
0x149f   :  { %931 = vrot.lane.b32.xlu1 %v985_v4, %s1240_s21 }
0x14a0   :  { %v936_v14 = vpop.permute.xlu0 %935 }
0x14a1   :  { %v938_v27 = vmul.f32 %v936_v14, %v924_v15 }
0x150d   :  { %v904_v13 = vpop.permute.xlu1 %903 }
0x150e   :  { %v906_v16 = vmul.f32 %v1229_v61, %v904_v13 }
0x1511   :  { %v932_v17 = vpop.permute.xlu1 %931 }
0x1512   :  { %v934_v18 = vmul.f32 %v932_v17, %v906_v16 }
0x1514   :  { %v939_v3 = vadd.f32 %v938_v27, %v934_v18 }
0x1516   :  { %941 = vrot.lane.b32.xlu1 %v939_v3, %s1241_s24 }
0x1588   :  { %v942_v19 = vpop.permute.xlu1 %941 }
0x1589   :  { %v944_v24 = vsel %vm205_vm2, %v942_v19, 0.0 }
0x158a   :  { %945 = vadd.xlane.f32.xlu0 %v944_v24 }
0x1617   :  { %v946_v20 = vpop.xlane.xlu0 %945 }
0x1618   :  { %v954_v46 = vadd.f32 %v986_v31, %v946_v20 }
0x161a   :  { %956 = vst.msk [vmem:[%s1485_s6] sm:$0xff] %vm955_vm3, %v954_v46 }

</bundles_post_ra>
